<compile_context>
chip_gen: v5e
topology: v5e:2x2
jax: 0.10.0
libtpu: 0.0.40
codegen_flags: <defaults>
</compile_context>

<pallas_src>
import functools

import jax
import jax.numpy as jnp
from jax import lax
from jax.experimental import pallas as pl
from jax.experimental.pallas import tpu as pltpu

_BIG = 1e30  # half-squared-norm assigned to padded codebook rows (never wins argmin)


def _round_up(v, m):
    return (v + m - 1) // m * m


def _choose_tiles(N, K, H):
    """Pick (row tile, code chunk, padded K) so intermediates fit VMEM everywhere."""
    Kp = _round_up(K, 128)
    Kc = min(Kp, 1024)            # code chunk streamed per inner grid step
    Kp = _round_up(Kp, Kc)        # make chunks divide the padded codebook
    tm = _round_up(min(512, _round_up(N, 8)), 8)

    def vmem_bytes(tm_):
        inter = 4 * tm_ * Kc * 4              # scores/d/iota/select f32 temporaries
        bufs = 2 * 2 * (tm_ * H + Kc * H)     # double-buffered bf16 x / E tiles
        return inter + bufs

    # Stay well inside the smallest per-generation budgets (v5e scoped default,
    # v7x 64 MiB physical) even before the compiler's own reuse kicks in.
    while tm > 8 and vmem_bytes(tm) > 24 * 1024 * 1024:
        tm = max(8, _round_up(tm // 2, 8))
    return tm, Kc, Kp


def _vq_kernel(x_ref, e_ref, esqh_ref, idx_ref, sqerr_ref, dmin_sc, idx_sc):
    # x_ref:     (tm, H)   bf16 input rows (same block for every code chunk)
    # e_ref:     (Kc, H)   bf16 codebook chunk
    # esqh_ref:  (1, Kc)   f32 0.5*||e||^2 (padded rows = _BIG)
    # idx_ref:   (tm, 1)   int32 nearest-code index (resident across code chunks)
    # sqerr_ref: (tm, 1)   f32 per-row ||x - e_idx||^2
    # dmin_sc:   (tm, 1)   f32 running min half-distance
    # idx_sc:    (tm, 1)   int32 running argmin
    k = pl.program_id(1)
    nk = pl.num_programs(1)
    kc = e_ref.shape[0]

    @pl.when(k == 0)
    def _():
        dmin_sc[...] = jnp.full_like(dmin_sc, jnp.inf)
        idx_sc[...] = jnp.zeros_like(idx_sc)

    x = x_ref[...]                       # (tm, H)  bf16
    e = e_ref[...]                       # (Kc, H)  bf16

    # x @ E^T on the MXU, bf16 operands, f32 accumulation.
    scores = lax.dot_general(
        x, e, (((1,), (1,)), ((), ())), preferred_element_type=jnp.float32
    )                                    # (tm, Kc) f32

    # Half-distances: 0.5*||e||^2 - x.e   (the per-row ||x||^2/2 constant is
    # irrelevant for argmin; the 2x is folded into the precomputed norms).
    d = esqh_ref[...] - scores           # (tm, Kc)

    # Chunk-local argmin with first-index tie-break.
    d_loc = jnp.min(d, axis=-1, keepdims=True)                       # (tm, 1)
    lane = lax.broadcasted_iota(jnp.int32, d.shape, 1)
    idx_loc = jnp.min(jnp.where(d == d_loc, lane, kc), axis=-1, keepdims=True)

    # Online cross-chunk argmin; strict '<' keeps the earlier (lower) index on ties.
    better = d_loc < dmin_sc[...]
    idx_sc[...] = jnp.where(better, idx_loc + k * kc, idx_sc[...])
    dmin_sc[...] = jnp.where(better, d_loc, dmin_sc[...])

    @pl.when(k == nk - 1)
    def _():
        idx_ref[...] = idx_sc[...]
        xf = x.astype(jnp.float32)
        x_sq = jnp.sum(xf * xf, axis=-1, keepdims=True)               # (tm, 1)
        # ||x - e_idx||^2 = ||x||^2 + 2 * (0.5*||e_idx||^2 - x.e_idx)
        sqerr_ref[...] = x_sq + 2.0 * dmin_sc[...]


@jax.jit
def vector_quantizer_forward(inputs, embeddings, commitment_cost):
    """inputs: (B, L, H); embeddings: (K, H).

    Returns (quantized (B,L,H) f32, loss scalar f32, encoding_indices (B,L,1) i32).
    """
    B, L, H = inputs.shape
    K = embeddings.shape[0]
    N = B * L

    tm, Kc, Kp = _choose_tiles(N, K, H)

    # bf16 MXU feed (half the DMA bytes); the f32 codebook is kept for the
    # wrapper gather and the exact 0.5*||e||^2 norms.
    x_bf = inputs.reshape(N, H).astype(jnp.bfloat16)
    e32 = embeddings.astype(jnp.float32)
    e_bf = jnp.pad(e32, ((0, Kp - K), (0, 0))).astype(jnp.bfloat16)

    esq_half = 0.5 * jnp.sum(e32 * e32, axis=1)
    esq_half = jnp.pad(esq_half, (0, Kp - K), constant_values=_BIG)
    esq_half = esq_half.reshape(1, Kp).astype(jnp.float32)

    grid = (pl.cdiv(N, tm), Kp // Kc)
    idx_col, sqerr_col = pl.pallas_call(
        _vq_kernel,
        out_shape=(
            jax.ShapeDtypeStruct((N, 1), jnp.int32),
            jax.ShapeDtypeStruct((N, 1), jnp.float32),
        ),
        grid_spec=pltpu.PrefetchScalarGridSpec(
            num_scalar_prefetch=0,
            grid=grid,
            in_specs=[
                pl.BlockSpec((tm, H), lambda i, k: (i, 0)),    # input row tile (bf16)
                pl.BlockSpec((Kc, H), lambda i, k: (k, 0)),    # codebook chunk (bf16)
                pl.BlockSpec((1, Kc), lambda i, k: (0, k)),    # 0.5*||e||^2 (f32)
            ],
            out_specs=[
                pl.BlockSpec((tm, 1), lambda i, k: (i, 0)),    # nearest-code index
                pl.BlockSpec((tm, 1), lambda i, k: (i, 0)),    # per-row ||x - e_idx||^2
            ],
            scratch_shapes=[
                pltpu.VMEM((tm, 1), jnp.float32),              # running min half-distance
                pltpu.VMEM((tm, 1), jnp.int32),                # running argmin
            ],
        ),
        compiler_params=pltpu.CompilerParams(
            dimension_semantics=("parallel", "arbitrary"),
            vmem_limit_bytes=64 * 1024 * 1024,
        ),
    )(x_bf, e_bf, esq_half)

    # Codebook gather in the wrapper (same N*H bytes as writing q from the kernel,
    # but no second MXU matmul) from the full-precision codebook.
    idx_flat = idx_col[:, 0]
    quantized = e32[idx_flat].reshape(B, L, H)
    indices = idx_col.reshape(B, L, 1)

    # Forward-pass loss value: q_latent + cc * e_latent == (1 + cc) * mse(q, x),
    # assembled from the kernel's fused per-row squared errors.
    sqerr = jnp.maximum(sqerr_col[:, 0], 0.0)   # guard tiny negatives from cancellation
    loss = (1.0 + commitment_cost) * (jnp.sum(sqerr) / (N * H))

    # Forward value of the straight-through output is exactly `quantized`.
    # TODO(synk): implement the straight-through backward with jax.custom_vjp.
    return quantized, loss, indices


def _reference(inputs, embeddings, commitment_cost):
    B, L, H = inputs.shape
    x = inputs.reshape(-1, H).astype(jnp.float32)
    e32 = embeddings.astype(jnp.float32)
    # Emulate the kernel's bf16 MXU feed for the distance / argmin.
    xb = x.astype(jnp.bfloat16).astype(jnp.float32)
    eb = e32.astype(jnp.bfloat16).astype(jnp.float32)
    d = 0.5 * jnp.sum(e32 * e32, axis=1)[None, :] - xb @ eb.T
    idx = jnp.argmin(d, axis=1).astype(jnp.int32)
    q = e32[idx].reshape(B, L, H)
    mse = jnp.mean((q - x.reshape(B, L, H)) ** 2)
    loss = (1.0 + commitment_cost) * mse
    return q, loss, idx.reshape(B, L, 1)


if __name__ == "__main__":
    # Small shapes consistent with the module: B=2, L=8, embedding_dim=32,
    # num_embeddings=64, commitment_cost=0.25.
    B, L, H, K = 2, 8, 32, 64
    commitment_cost = 0.25

    key = jax.random.PRNGKey(0)
    kx, ke = jax.random.split(key)

    inputs = jax.random.normal(kx, (B, L, H), dtype=jnp.float32)
    # Matches nn.Embedding init: uniform(-1/num_embeddings, 1/num_embeddings).
    embeddings = jax.random.uniform(
        ke, (K, H), dtype=jnp.float32, minval=-1.0 / K, maxval=1.0 / K
    )

    q, loss, idx = vector_quantizer_forward(inputs, embeddings, commitment_cost)
    q, loss, idx = jax.block_until_ready((q, loss, idx))

    q_ref, loss_ref, idx_ref = _reference(inputs, embeddings, commitment_cost)

    assert q.shape == (B, L, H)
    assert idx.shape == (B, L, 1)
    assert jnp.array_equal(idx, idx_ref), "index mismatch vs reference"
    assert jnp.allclose(q, q_ref, atol=1e-6, rtol=1e-6), "quantized mismatch"
    assert jnp.allclose(loss, loss_ref, atol=1e-5, rtol=5e-3), "loss mismatch"

    print("KERNEL_OK")
</pallas_src>

<mosaic_0001>
module attributes {stable_mosaic.version = 11 : i64} {
  func.func @_vq_kernel(%arg0: i32, %arg1: i32, %arg2: memref<16x32xbf16, #tpu.memory_space<vmem>>, %arg3: memref<128x32xbf16, #tpu.memory_space<vmem>>, %arg4: memref<1x128xf32, #tpu.memory_space<vmem>>, %arg5: memref<16x1xi32, #tpu.memory_space<vmem>>, %arg6: memref<16x1xf32, #tpu.memory_space<vmem>>, %arg7: memref<16x1xf32, #tpu.memory_space<vmem>>, %arg8: memref<16x1xi32, #tpu.memory_space<vmem>>) attributes {dimension_semantics = [#tpu.dimension_semantics<parallel>, #tpu.dimension_semantics<arbitrary>], iteration_bounds = array<i64: 1, 1>, scalar_prefetch = 0 : i64, scratch_operands = 2 : i64, tpu.core_type = #tpu.core_type<tc>, window_params = [{transform_indices = @transform_0, window_bounds = array<i64: 16, 32>}, {transform_indices = @transform_1, window_bounds = array<i64: 128, 32>}, {transform_indices = @transform_2, window_bounds = array<i64: 1, 128>}, {transform_indices = @transform_3, window_bounds = array<i64: 16, 1>}, {transform_indices = @transform_4, window_bounds = array<i64: 16, 1>}]} {
    %c0_i32 = arith.constant 0 : i32
    %0 = arith.cmpi eq, %arg1, %c0_i32 : i32
    %1 = arith.extui %0 : i1 to i32
    %c0_i32_0 = arith.constant 0 : i32
    %2 = arith.cmpi ne, %1, %c0_i32_0 : i32
    scf.if %2 {
      %cst_21 = arith.constant 0x7F800000 : f32
      %32 = vector.broadcast %cst_21 : f32 to vector<16x1xf32>
      %c0_22 = arith.constant 0 : index
      %c0_23 = arith.constant 0 : index
      %33 = vector.load %arg7[%c0_22, %c0_23] : memref<16x1xf32, #tpu.memory_space<vmem>>, vector<16x1xf32>
      tpu.vector_store %arg7[%c0_22, %c0_23], %32 {strides = array<i32>} : memref<16x1xf32, #tpu.memory_space<vmem>>, vector<16x1xf32>,
      %c0_i32_24 = arith.constant 0 : i32
      %34 = vector.broadcast %c0_i32_24 : i32 to vector<16x1xi32>
      %c0_25 = arith.constant 0 : index
      %c0_26 = arith.constant 0 : index
      %35 = vector.load %arg8[%c0_25, %c0_26] : memref<16x1xi32, #tpu.memory_space<vmem>>, vector<16x1xi32>
      tpu.vector_store %arg8[%c0_25, %c0_26], %34 {strides = array<i32>} : memref<16x1xi32, #tpu.memory_space<vmem>>, vector<16x1xi32>,
    } else {
    }
    %c0 = arith.constant 0 : index
    %c0_1 = arith.constant 0 : index
    %3 = vector.load %arg2[%c0, %c0_1] : memref<16x32xbf16, #tpu.memory_space<vmem>>, vector<16x32xbf16>
    %c0_2 = arith.constant 0 : index
    %c0_3 = arith.constant 0 : index
    %4 = vector.load %arg3[%c0_2, %c0_3] : memref<128x32xbf16, #tpu.memory_space<vmem>>, vector<128x32xbf16>
    %cst = arith.constant dense<0.000000e+00> : vector<16x128xf32>
    %5 = tpu.matmul %3, %4, %cst {dimension_numbers = #tpu.dot_dimension_numbers<[1], [1], [0], [0], [0, 0, 1, 0], [], []>} : vector<16x32xbf16>, vector<128x32xbf16>, vector<16x128xf32> -> vector<16x128xf32>
    %c0_4 = arith.constant 0 : index
    %c0_5 = arith.constant 0 : index
    %6 = vector.load %arg4[%c0_4, %c0_5] : memref<1x128xf32, #tpu.memory_space<vmem>>, vector<1x128xf32>
    %7 = vector.broadcast %6 : vector<1x128xf32> to vector<16x128xf32>
    %8 = arith.subf %7, %5 : vector<16x128xf32>
    %cst_6 = arith.constant dense<0x7F800000> : vector<16xf32>
    %9 = vector.multi_reduction <minimumf>, %8, %cst_6 [1] : vector<16x128xf32> to vector<16xf32>
    %10 = vector.shape_cast %9 : vector<16xf32> to vector<16x1xf32>
    %11 = tpu.iota {dimensions = array<i32: 1>} : vector<16x128xi32>
    %12 = vector.broadcast %10 : vector<16x1xf32> to vector<16x128xf32>
    %13 = arith.cmpf oeq, %8, %12 : vector<16x128xf32>
    %c128_i32 = arith.constant 128 : i32
    %14 = vector.broadcast %c128_i32 : i32 to vector<16x128xi32>
    %15 = arith.select %13, %11, %14 : vector<16x128xi1>, vector<16x128xi32>
    %cst_7 = arith.constant dense<2147483647> : vector<16xi32>
    %16 = vector.multi_reduction <minsi>, %15, %cst_7 [1] : vector<16x128xi32> to vector<16xi32>
    %17 = vector.shape_cast %16 : vector<16xi32> to vector<16x1xi32>
    %c0_8 = arith.constant 0 : index
    %c0_9 = arith.constant 0 : index
    %18 = vector.load %arg7[%c0_8, %c0_9] : memref<16x1xf32, #tpu.memory_space<vmem>>, vector<16x1xf32>
    %19 = arith.cmpf olt, %10, %18 : vector<16x1xf32>
    %c128_i32_10 = arith.constant 128 : i32
    %20 = arith.muli %arg1, %c128_i32_10 : i32
    %21 = vector.broadcast %20 : i32 to vector<16x1xi32>
    %22 = arith.addi %17, %21 : vector<16x1xi32>
    %c0_11 = arith.constant 0 : index
    %c0_12 = arith.constant 0 : index
    %23 = vector.load %arg8[%c0_11, %c0_12] : memref<16x1xi32, #tpu.memory_space<vmem>>, vector<16x1xi32>
    %24 = arith.select %19, %22, %23 : vector<16x1xi1>, vector<16x1xi32>
    %c0_13 = arith.constant 0 : index
    %c0_14 = arith.constant 0 : index
    %25 = vector.load %arg8[%c0_13, %c0_14] : memref<16x1xi32, #tpu.memory_space<vmem>>, vector<16x1xi32>
    tpu.vector_store %arg8[%c0_13, %c0_14], %24 {strides = array<i32>} : memref<16x1xi32, #tpu.memory_space<vmem>>, vector<16x1xi32>,
    %c0_15 = arith.constant 0 : index
    %c0_16 = arith.constant 0 : index
    %26 = vector.load %arg7[%c0_15, %c0_16] : memref<16x1xf32, #tpu.memory_space<vmem>>, vector<16x1xf32>
    %27 = arith.select %19, %10, %26 : vector<16x1xi1>, vector<16x1xf32>
    %c0_17 = arith.constant 0 : index
    %c0_18 = arith.constant 0 : index
    %28 = vector.load %arg7[%c0_17, %c0_18] : memref<16x1xf32, #tpu.memory_space<vmem>>, vector<16x1xf32>
    tpu.vector_store %arg7[%c0_17, %c0_18], %27 {strides = array<i32>} : memref<16x1xf32, #tpu.memory_space<vmem>>, vector<16x1xf32>,
    %c0_i32_19 = arith.constant 0 : i32
    %29 = arith.cmpi eq, %arg1, %c0_i32_19 : i32
    %30 = arith.extui %29 : i1 to i32
    %c0_i32_20 = arith.constant 0 : i32
    %31 = arith.cmpi ne, %30, %c0_i32_20 : i32
    scf.if %31 {
      %c0_21 = arith.constant 0 : index
      %c0_22 = arith.constant 0 : index
      %32 = vector.load %arg8[%c0_21, %c0_22] : memref<16x1xi32, #tpu.memory_space<vmem>>, vector<16x1xi32>
      %c0_23 = arith.constant 0 : index
      %c0_24 = arith.constant 0 : index
      %33 = vector.load %arg5[%c0_23, %c0_24] : memref<16x1xi32, #tpu.memory_space<vmem>>, vector<16x1xi32>
      tpu.vector_store %arg5[%c0_23, %c0_24], %32 {strides = array<i32>} : memref<16x1xi32, #tpu.memory_space<vmem>>, vector<16x1xi32>,
      %34 = arith.extf %3 : vector<16x32xbf16> to vector<16x32xf32>
      %35 = arith.mulf %34, %34 : vector<16x32xf32>
      %cst_25 = arith.constant dense<0.000000e+00> : vector<16xf32>
      %36 = vector.multi_reduction <add>, %35, %cst_25 [1] : vector<16x32xf32> to vector<16xf32>
      %37 = vector.shape_cast %36 : vector<16xf32> to vector<16x1xf32>
      %c0_26 = arith.constant 0 : index
      %c0_27 = arith.constant 0 : index
      %38 = vector.load %arg7[%c0_26, %c0_27] : memref<16x1xf32, #tpu.memory_space<vmem>>, vector<16x1xf32>
      %cst_28 = arith.constant 2.000000e+00 : f32
      %39 = vector.broadcast %cst_28 : f32 to vector<16x1xf32>
      %40 = arith.mulf %39, %38 : vector<16x1xf32>
      %41 = arith.addf %37, %40 : vector<16x1xf32>
      %c0_29 = arith.constant 0 : index
      %c0_30 = arith.constant 0 : index
      %42 = vector.load %arg6[%c0_29, %c0_30] : memref<16x1xf32, #tpu.memory_space<vmem>>, vector<16x1xf32>
      tpu.vector_store %arg6[%c0_29, %c0_30], %41 {strides = array<i32>} : memref<16x1xf32, #tpu.memory_space<vmem>>, vector<16x1xf32>,
    } else {
    }
    return
  }
  func.func @transform_0(%arg0: i32, %arg1: i32) -> (i32, i32) {
    %c0_i32 = arith.constant 0 : i32
    %c0_i32_0 = arith.constant 0 : i32
    return %arg0, %c0_i32 : i32, i32
  }
  func.func @transform_1(%arg0: i32, %arg1: i32) -> (i32, i32) {
    %c0_i32 = arith.constant 0 : i32
    %c0_i32_0 = arith.constant 0 : i32
    return %arg1, %c0_i32 : i32, i32
  }
  func.func @transform_2(%arg0: i32, %arg1: i32) -> (i32, i32) {
    %c0_i32 = arith.constant 0 : i32
    %c0_i32_0 = arith.constant 0 : i32
    return %c0_i32, %arg1 : i32, i32
  }
  func.func @transform_3(%arg0: i32, %arg1: i32) -> (i32, i32) {
    %c0_i32 = arith.constant 0 : i32
    %c0_i32_0 = arith.constant 0 : i32
    return %arg0, %c0_i32 : i32, i32
  }
  func.func @transform_4(%arg0: i32, %arg1: i32) -> (i32, i32) {
    %c0_i32 = arith.constant 0 : i32
    %c0_i32_0 = arith.constant 0 : i32
    return %arg0, %c0_i32 : i32, i32
  }
}

</mosaic_0001>

<bundles_post_ra>
// kernel: vector_quantizer_forward.1
= control target key start
LH: loop header
LB: loop body
LE: loop exit
PB: predicated region body
PF: predicated region fallthrough
CT: control target
= control target key end

     0   :  { %vm88_vm0 = vcmask 261120   ;;  %vm20_vm1 = vcmask 7168   ;;  %v277_v17 = vmov inf   ;;  %v140_v27 = vlaneseq  ;;  %s379_s1 = inlined_call_operand.vmem [shape: bf16[128,32], index: 1, kind: input, shape index: {}]   ;;  %s380_s2 = inlined_call_operand.vmem [shape: f32[1,128], index: 2, kind: input, shape index: {}]   ;;  %s381_s0 = inlined_call_operand.vmem [shape: bf16[16,32], index: 0, kind: input, shape index: {}]   ;;  %s382_s4 = inlined_call_operand.vmem [shape: f32[16,1], index: 4, kind: output, shape index: {1}]   ;;  %s383_s3 = inlined_call_operand.vmem [shape: s32[16,1], index: 3, kind: output, shape index: {0}]  }
   0x1   :  { %v273_v0 = vld [vmem:[%s379_s1 + $0x38] sm:$0xff]  ;;  %v272_v2 = vld [vmem:[%s379_s1 + $0x30] sm:$0xff]  ;;  %v271_v4 = vld [vmem:[%s379_s1 + $0x28] sm:$0xff]  ;;  %21 = vst.msk [vmem:[#allocation2] sm:$0xff] %vm20_vm1, %v277_v17  ;;  %v278_v49 = vmov 0  }
   0x2   :  { %v114_v1 = vsel %vm88_vm0, %v273_v0, 0  ;;  %v111_v3 = vsel %vm88_vm0, %v272_v2, 0  ;;  %v108_v5 = vsel %vm88_vm0, %v271_v4, 0  ;;  %v270_v6 = vld [vmem:[%s379_s1 + $0x20] sm:$0xff]  ;;  %v269_v8 = vld [vmem:[%s379_s1 + $0x18] sm:$0xff]  ;;  %v268_v10 = vld [vmem:[%s379_s1 + $0x10] sm:$0xff] }
   0x3   :  { %116 = vmatpush.bf16.xpose.msra.mxu0 %v114_v1  ;;  %v105_v7 = vsel %vm88_vm0, %v270_v6, 0  ;;  %v102_v9 = vsel %vm88_vm0, %v269_v8, 0  ;;  %v99_v11 = vsel %vm88_vm0, %v268_v10, 0  ;;  %v267_v12 = vld [vmem:[%s379_s1 + $0x8] sm:$0xff]  ;;  %v266_v14 = vld [vmem:[%s379_s1] sm:$0xff]  ;;  %22 = vst.msk [vmem:[#allocation2 + $0x8] sm:$0xff] %vm20_vm1, %v277_v17 }
   0x4   :  { %v96_v13 = vsel %vm88_vm0, %v267_v12, 0  ;;  %v93_v15 = vsel %vm88_vm0, %v266_v14, 0  ;;  %v265_v16 = vld [vmem:[%s381_s0] sm:$0xff]  ;;  %v141_v29 = vand.u32 127, %v140_v27  ;;  %23 = vst.msk [vmem:[#allocation3] sm:$0xff] %vm20_vm1, %v278_v49 }
   0x5   :  { %v276_v18 = vld [vmem:[%s380_s2] ss:$0 sm:$0xff]  ;;  %v26_v37 = vld [vmem:[%s381_s0 + $0x4] sm:$0xf]  ;;  %24 = vst.msk [vmem:[#allocation3 + $0x8] sm:$0xff] %vm20_vm1, %v278_v49 }
   0x6   :  { %v25_v21 = vld [vmem:[%s381_s0] sm:$0xf]  ;;  %v203_v42 = vunpack.c.l.bf16 %v26_v37 }
   0x7   :  { %v202_v23 = vunpack.c.l.bf16 %v25_v21 }
   0x8   :  { %v174_v28 = vld [vmem:[#allocation2] sm:$0xff]  ;;  %v205_v46 = vmul.f32 %v203_v42, %v203_v42 }
   0x9   :  { %v204_v25 = vmul.f32 %v202_v23, %v202_v23 }
   0xa   :  { %v175_v35 = vld [vmem:[#allocation2 + $0x8] sm:$0xff]  ;;  %v209_v48 = vsel %vm88_vm0, %v205_v46, 0.0 }
   0xb   :  { %117 = vmatpush.bf16.xpose.msra.mxu0 %v111_v3  ;;  %v206_v26 = vsel %vm88_vm0, %v204_v25, 0.0  ;;  %v182_v2 = vld [vmem:[#allocation3] sm:$0xff] }
  0x13   :  { %118 = vmatpush.bf16.xpose.msra.mxu0 %v108_v5 }
  0x1b   :  { %119 = vmatpush.bf16.xpose.msra.mxu0 %v105_v7 }
  0x23   :  { %120 = vmatpush.bf16.xpose.msra.mxu0 %v102_v9  ;;  %v183_v9 = vld [vmem:[#allocation3 + $0x8] sm:$0xff] }
  0x2b   :  { %121 = vmatpush.bf16.xpose.msra.mxu0 %v99_v11 }
  0x33   :  { %122 = vmatpush.bf16.xpose.msra.mxu0 %v96_v13 }
  0x3b   :  { %123 = vmatpush.bf16.xpose.msra.mxu0 %v93_v15 }
  0x42   :  { %264 = vmatmul.msk.bf16.vlgmr.msra.gmra.mxu0 %vm88_vm0, %v265_v16 }
  0xbf   :  { %v125_v19 = vpop.f32.mrf.mxu0 }
  0xc0   :  { %v134_v20 = vsub.f32 %v276_v18, %v125_v19 }
  0xc2   :  { %136 = vmin.xlane.f32.xlu0 %v134_v20 }
  0xc7   :  { %v127_v22 = vpop.f32.mrf.mxu0 }
  0xc8   :  { %v135_v24 = vsub.f32 %v276_v18, %v127_v22 }
  0xca   :  { %138 = vmin.xlane.f32.xlu0 %v135_v24 }
  0xd2   :  { %207 = vadd.xlane.f32.xlu0 %v206_v26 }
 0x135   :  { %v137_v30 = vpop.xlane.xlu0 %136 }
 0x136   :  { %vm142_vm2 = vcmp.eq.f32.partialorder %v134_v20, %v137_v30  ;;  %vm176_vm3 = vcmp.lt.f32.partialorder %v137_v30, %v174_v28 }
 0x137   :  { %v191_v31 = vsel %vm176_vm3, %v137_v30, %v174_v28  ;;  %v144_v32 = vsel %vm142_vm2, %v141_v29, 128 }
 0x138   :  { %193 = vst.msk [vmem:[#allocation2] sm:$0xff] %vm20_vm1, %v191_v31  ;;  %v147_v33 = vshra.s32 %v144_v32, 16  ;;  %v146_v50 = vand.u32 65535, %v144_v32 }
 0x13a   :  { %v149_v34 = vcvt.s32.f32 %v147_v33  ;;  %v148_v52 = vcvt.s32.f32 %v146_v50 }
 0x13c   :  { %150 = vmin.xlane.f32.xlu1 %v149_v34 }
 0x13d   :  { %v139_v36 = vpop.xlane.xlu0 %138 }
 0x13e   :  { %vm143_vm4 = vcmp.eq.f32.partialorder %v135_v24, %v139_v36  ;;  %vm177_vm5 = vcmp.lt.f32.partialorder %v139_v36, %v175_v35 }
 0x13f   :  { %v192_v38 = vsel %vm177_vm5, %v139_v36, %v175_v35  ;;  %v145_v39 = vsel %vm143_vm4, %v141_v29, 128  ;;  %v212_v41 = vld [vmem:[#allocation2] sm:$0xff] }
 0x140   :  { %194 = vst.msk [vmem:[#allocation2 + $0x8] sm:$0xff] %vm20_vm1, %v192_v38  ;;  %v161_v40 = vshra.s32 %v145_v39, 16  ;;  %v214_v44 = vmul.f32 2.0, %v212_v41  ;;  %v160_v54 = vand.u32 65535, %v145_v39 }
 0x142   :  { %v163_v43 = vcvt.s32.f32 %v161_v40  ;;  %v162_v56 = vcvt.s32.f32 %v160_v54 }
 0x144   :  { %164 = vmin.xlane.f32.xlu1 %v163_v43 }
 0x145   :  { %v208_v45 = vpop.xlane.xlu0 %207 }
 0x146   :  { %v216_v47 = vadd.f32 %v214_v44, %v208_v45 }
 0x147   :  { %v213_v58 = vld [vmem:[#allocation2 + $0x8] sm:$0xff] }
 0x148   :  { %218 = vst.msk [vmem:[%s382_s4] sm:$0xff] %vm20_vm1, %v216_v47  ;;  %v215_v59 = vmul.f32 2.0, %v213_v58 }
 0x14c   :  { %210 = vadd.xlane.f32.xlu1 %v209_v48 }
 0x1af   :  { %v151_v51 = vpop.xlane.xlu1 %150 }
 0x1b0   :  { %vm152_vm6 = vcmp.eq.f32.partialorder %v149_v34, %v151_v51  ;;  %v157_v62 = vcvt.f32.s32 %v151_v51 }
 0x1b1   :  { %v153_v53 = vsel %vm152_vm6, %v148_v52, inf }
 0x1b2   :  { %154 = vmin.xlane.f32.xlu2 %v153_v53  ;;  %v158_v0 = vshll.u32 %v157_v62, 16 }
 0x1b7   :  { %v165_v55 = vpop.xlane.xlu1 %164 }
 0x1b8   :  { %vm166_vm7 = vcmp.eq.f32.partialorder %v163_v43, %v165_v55  ;;  %v171_v4 = vcvt.f32.s32 %v165_v55 }
 0x1b9   :  { %v167_v57 = vsel %vm166_vm7, %v162_v56, inf }
 0x1ba   :  { %168 = vmin.xlane.f32.xlu2 %v167_v57  ;;  %v172_v7 = vshll.u32 %v171_v4, 16 }
 0x1bf   :  { %v211_v60 = vpop.xlane.xlu1 %210 }
 0x1c0   :  { %v217_v61 = vadd.f32 %v215_v59, %v211_v60 }
 0x1c2   :  { %219 = vst.msk [vmem:[%s382_s4 + $0x8] sm:$0xff] %vm20_vm1, %v217_v61 }
 0x225   :  { %v155_v63 = vpop.xlane.xlu2 %154 }
 0x226   :  { %v156_v1 = vcvt.f32.s32 %v155_v63 }
 0x228   :  { %v159_v3 = vadd.s32 %v158_v0, %v156_v1 }
 0x22a   :  { %v184_v5 = vsel %vm176_vm3, %v159_v3, %v182_v2 }
 0x22b   :  { %187 = vst.msk [vmem:[#allocation3] sm:$0xff] %vm20_vm1, %v184_v5 }
 0x22d   :  { %v169_v6 = vpop.xlane.xlu2 %168 }
 0x22e   :  { %v170_v8 = vcvt.f32.s32 %v169_v6 }
 0x230   :  { %v173_v10 = vadd.s32 %v172_v7, %v170_v8 }
 0x232   :  { %v198_v11 = vld [vmem:[#allocation3] sm:$0xff]  ;;  %v185_v12 = vsel %vm177_vm5, %v173_v10, %v183_v9 }
 0x233   :  { %200 = vst.msk [vmem:[%s383_s3] sm:$0xff] %vm20_vm1, %v198_v11 }
 0x234   :  { %188 = vst.msk [vmem:[#allocation3 + $0x8] sm:$0xff] %vm20_vm1, %v185_v12 }
 0x23b   :  { %v199_v13 = vld [vmem:[#allocation3 + $0x8] sm:$0xff] }
 0x23c   :  { %201 = vst.msk [vmem:[%s383_s3 + $0x8] sm:$0xff] %vm20_vm1, %v199_v13 }

</bundles_post_ra>
